<compile_context>
chip_gen: v7x
topology: tpu7x:2x2x1
jax: 0.10.0
libtpu: 0.0.40
codegen_flags: <defaults>
</compile_context>

<pallas_src>
import functools

import jax
import jax.numpy as jnp
from jax import lax
from jax.experimental import pallas as pl
from jax.experimental.pallas import tpu as pltpu

_LN_EPS = 1e-6   # timm ViT LayerNorm eps
_GN_EPS = 1e-5   # GroupNormAct eps
_WS_EPS = 1e-8   # StdConv2dSame weight-standardization eps
_VMEM_LIMIT = 32 * 1024 * 1024


def _round_up(x, m):
    return (x + m - 1) // m * m


def _m_tiling(M):
    if M <= 512:
        return M, 1, M                      # tm, nm, Mp (full block, no pad)
    for tm in (512, 256, 128, 64, 32, 16, 8):
        if M % tm == 0:
            return tm, M // tm, M
    Mp = _round_up(M, 256)                  # ragged fallback (unused in this script)
    return 256, Mp // 256, Mp


def _k_tiling(K):
    if K <= 1024:
        return K, 1, K                      # tk, nk, Kp (single, unpadded K tile)
    for tk in (512, 384, 256, 128):
        if K % tk == 0:
            return tk, K // tk, K
    Kp = _round_up(K, 128)                  # ragged fallback (unused in this script)
    for tk in (512, 256, 128):
        if Kp % tk == 0:
            return tk, Kp // tk, Kp


# ---------------------------------------------------------------------------
# Pallas kernel 1: fused matmul  (optional LayerNorm prologue; bias + residual
# + ReLU/GELU epilogue; bf16 MXU inputs; f32 accumulation directly in o_ref)
# ---------------------------------------------------------------------------
def _make_mm_kernel(nk, activation, has_ln, has_res):
    def kernel(*refs):
        a_ref, b_ref, bias_ref = refs[0], refs[1], refs[2]
        idx = 3
        if has_ln:
            lng_ref, lnb_ref = refs[idx], refs[idx + 1]
            idx += 2
        if has_res:
            res_ref = refs[idx]
            idx += 1
        o_ref = refs[idx]

        a = a_ref[...]
        if has_ln:
            # LayerNorm prologue (requires the full K dim in this tile; enforced in wrapper).
            x = a.astype(jnp.float32)
            mean = jnp.mean(x, axis=-1, keepdims=True)
            var = jnp.mean(x * x, axis=-1, keepdims=True) - mean * mean
            x = (x - mean) * lax.rsqrt(var + _LN_EPS)
            x = x * lng_ref[...] + lnb_ref[...]
            a_bf = x.astype(jnp.bfloat16)
        else:
            a_bf = a.astype(jnp.bfloat16)
        b_bf = b_ref[...].astype(jnp.bfloat16)
        part = jnp.dot(a_bf, b_bf, preferred_element_type=jnp.float32)

        def epilogue(acc):
            y = acc + bias_ref[...]
            if has_res:
                y = y + res_ref[...].astype(jnp.float32)
            if activation == "relu":
                y = jnp.maximum(y, 0.0)
            elif activation == "gelu":
                # tanh-approx GELU (EUP-friendly); timm uses exact erf GELU.
                y = jax.nn.gelu(y, approximate=True)
            return y

        if nk == 1:
            o_ref[...] = epilogue(part)
        else:
            k = pl.program_id(1)

            @pl.when(k == 0)
            def _():
                o_ref[...] = part

            @pl.when(jnp.logical_and(k > 0, k < nk - 1))
            def _():
                o_ref[...] += part

            @pl.when(k == nk - 1)
            def _():
                o_ref[...] = epilogue(o_ref[...] + part)

    return kernel


@functools.lru_cache(maxsize=None)
def _get_matmul(Mp, Kp, N, tm, tk, nm, nk, activation, has_ln, has_res):
    kernel = _make_mm_kernel(nk, activation, has_ln, has_res)
    in_specs = [
        pl.BlockSpec((tm, tk), lambda m, k: (m, k)),     # A tile
        pl.BlockSpec((tk, N), lambda m, k: (k, 0)),      # B tile (full N)
        pl.BlockSpec((1, N), lambda m, k: (0, 0)),       # bias
    ]
    if has_ln:
        in_specs += [pl.BlockSpec((1, Kp), lambda m, k: (0, 0)),   # LN gamma
                     pl.BlockSpec((1, Kp), lambda m, k: (0, 0))]   # LN beta
    if has_res:
        in_specs.append(pl.BlockSpec((tm, N), lambda m, k: (m, 0)))
    fn = pl.pallas_call(
        kernel,
        out_shape=jax.ShapeDtypeStruct((Mp, N), jnp.float32),
        grid=(nm, nk),
        in_specs=in_specs,
        out_specs=pl.BlockSpec((tm, N), lambda m, k: (m, 0)),
        compiler_params=pltpu.CompilerParams(
            dimension_semantics=("parallel", "arbitrary"),
            vmem_limit_bytes=_VMEM_LIMIT),
    )
    return jax.jit(fn)


def fused_matmul(a, b, bias, *, activation=None, ln=None, residual=None):
    """(relu|gelu)( LN?(a) @ b + bias (+ residual) ), f32 output."""
    M, K = a.shape
    Kb, N = b.shape
    assert Kb == K
    tm, nm, Mp = _m_tiling(M)
    tk, nk, Kp = _k_tiling(K)
    has_ln = ln is not None
    has_res = residual is not None
    if has_ln:
        assert nk == 1 and Kp == K, "LN prologue needs one unpadded K tile"
        a = a.astype(jnp.float32)          # normalize in f32, cast to bf16 in-kernel
    else:
        a = a.astype(jnp.bfloat16)         # halve A DMA bytes, bf16 MXU path
    b = b.astype(jnp.bfloat16)
    if Mp != M:
        a = jnp.pad(a, ((0, Mp - M), (0, 0)))
    if Kp != K:
        a = jnp.pad(a, ((0, 0), (0, Kp - K)))
        b = jnp.pad(b, ((0, Kp - K), (0, 0)))
    args = [a, b, bias.astype(jnp.float32).reshape(1, N)]
    if has_ln:
        g, be = ln
        args += [g.astype(jnp.float32).reshape(1, K),
                 be.astype(jnp.float32).reshape(1, K)]
    if has_res:
        r = residual.astype(jnp.float32)
        if Mp != M:
            r = jnp.pad(r, ((0, Mp - M), (0, 0)))
        args.append(r)
    fn = _get_matmul(Mp, Kp, N, tm, tk, nm, nk, activation, has_ln, has_res)
    out = fn(*args)
    return out[:M] if Mp != M else out


# ---------------------------------------------------------------------------
# Pallas kernel 2: softmax attention, one (batch, head) per grid step
# ---------------------------------------------------------------------------
def _make_attn_kernel(scale):
    def kernel(q_ref, k_ref, v_ref, o_ref):
        q = q_ref[0]                                   # (T, Dh) bf16
        k = k_ref[0]
        v = v_ref[0]
        s = lax.dot_general(q, k, (((1,), (1,)), ((), ())),
                            preferred_element_type=jnp.float32) * scale   # (T, T)
        m = jnp.max(s, axis=-1, keepdims=True)
        p = jnp.exp(s - m)
        p = p / jnp.sum(p, axis=-1, keepdims=True)
        o_ref[0] = jnp.dot(p.astype(jnp.bfloat16), v,
                           preferred_element_type=jnp.float32)

    return kernel


@functools.lru_cache(maxsize=None)
def _get_attention(BH, T, Dh, scale):
    spec = pl.BlockSpec((1, T, Dh), lambda i: (i, 0, 0))
    fn = pl.pallas_call(
        _make_attn_kernel(scale),
        out_shape=jax.ShapeDtypeStruct((BH, T, Dh), jnp.float32),
        grid=(BH,),
        in_specs=[spec, spec, spec],
        out_specs=spec,
        compiler_params=pltpu.CompilerParams(
            dimension_semantics=("parallel",),
            vmem_limit_bytes=_VMEM_LIMIT),
    )
    return jax.jit(fn)


def attention(q, k, v, scale):
    BH, T, Dh = q.shape
    fn = _get_attention(BH, T, Dh, float(scale))
    return fn(q.astype(jnp.bfloat16), k.astype(jnp.bfloat16),
              v.astype(jnp.bfloat16))


# ---------------------------------------------------------------------------
# Pallas kernel 3: GroupNorm(32) + ReLU for the stem (per-sample grid)
# ---------------------------------------------------------------------------
def _gn_relu_kernel(x_ref, mavg_ref, g_ref, b_ref, o_ref):
    x = x_ref[0]                                        # (HW, C) f32
    s1 = jnp.sum(x, axis=0, keepdims=True)              # per-channel sums
    s2 = jnp.sum(x * x, axis=0, keepdims=True)
    # group-average matrix turns per-channel sums into per-channel group means
    mean = jnp.dot(s1, mavg_ref[...], preferred_element_type=jnp.float32)
    ex2 = jnp.dot(s2, mavg_ref[...], preferred_element_type=jnp.float32)
    var = ex2 - mean * mean
    inv = lax.rsqrt(var + _GN_EPS)
    y = (x - mean) * inv * g_ref[...] + b_ref[...]
    o_ref[0] = jnp.maximum(y, 0.0)


@functools.lru_cache(maxsize=None)
def _get_groupnorm_relu(B, HW, C):
    fn = pl.pallas_call(
        _gn_relu_kernel,
        out_shape=jax.ShapeDtypeStruct((B, HW, C), jnp.float32),
        grid=(B,),
        in_specs=[pl.BlockSpec((1, HW, C), lambda b: (b, 0, 0)),
                  pl.BlockSpec((C, C), lambda b: (0, 0)),
                  pl.BlockSpec((1, C), lambda b: (0, 0)),
                  pl.BlockSpec((1, C), lambda b: (0, 0))],
        out_specs=pl.BlockSpec((1, HW, C), lambda b: (b, 0, 0)),
        compiler_params=pltpu.CompilerParams(
            dimension_semantics=("parallel",),
            vmem_limit_bytes=_VMEM_LIMIT),
    )
    return jax.jit(fn)


def groupnorm_relu(x_nhwc, gamma, beta, groups):
    B, H, W, C = x_nhwc.shape
    HW = H * W
    gs = C // groups
    cidx = jnp.arange(C)
    same = (cidx[:, None] // gs) == (cidx[None, :] // gs)
    mavg = same.astype(jnp.float32) / float(HW * gs)
    fn = _get_groupnorm_relu(B, HW, C)
    out = fn(x_nhwc.reshape(B, HW, C).astype(jnp.float32), mavg,
             gamma.astype(jnp.float32).reshape(1, C),
             beta.astype(jnp.float32).reshape(1, C))
    return out.reshape(B, H, W, C)


# ---------------------------------------------------------------------------
# Plain-JAX glue: "same" padding, im2col for the 7x7 stem conv, max-pool
# ---------------------------------------------------------------------------
def _same_pad_1d(size, k, s):
    out = -(-size // s)
    pad = max((out - 1) * s + k - size, 0)
    return out, pad // 2, pad - pad // 2


def _im2col(x, kh, kw, stride, pads):
    (pt, pb), (plft, prt) = pads
    x = jnp.pad(x, ((0, 0), (pt, pb), (plft, prt), (0, 0)))
    B, Hp, Wp, C = x.shape
    Ho = (Hp - kh) // stride + 1
    Wo = (Wp - kw) // stride + 1
    cols = []
    for i in range(kh):
        for j in range(kw):
            cols.append(x[:, i:i + stride * Ho:stride, j:j + stride * Wo:stride, :])
    cols = jnp.stack(cols, axis=3)                      # (B,Ho,Wo,kh*kw,C)
    return cols.reshape(B * Ho * Wo, kh * kw * C), Ho, Wo


def maxpool_3x3_s2_same(x):
    B, H, W, C = x.shape
    Ho, pt, pb = _same_pad_1d(H, 3, 2)
    Wo, plft, prt = _same_pad_1d(W, 3, 2)
    xp = jnp.pad(x, ((0, 0), (pt, pb), (plft, prt), (0, 0)),
                 constant_values=-jnp.inf)
    out = None
    for i in range(3):
        for j in range(3):
            s = xp[:, i:i + 2 * Ho:2, j:j + 2 * Wo:2, :]
            out = s if out is None else jnp.maximum(out, s)
    return out


# ---------------------------------------------------------------------------
# Model pieces
# ---------------------------------------------------------------------------
def stem(x_nhwc, p):
    B, H, W, _ = x_nhwc.shape
    Ho, pt, pb = _same_pad_1d(H, 7, 2)
    Wo, plft, prt = _same_pad_1d(W, 7, 2)
    # TODO(synk): im2col materializes a ~12x-expanded copy of the 3-channel input in HBM;
    # fine at this scale (bf16), an in-kernel strided DMA gather would avoid it at 224x224.
    cols, _, _ = _im2col(x_nhwc.astype(jnp.bfloat16), 7, 7, 2,
                         ((pt, pb), (plft, prt)))
    y = fused_matmul(cols, p["stem_w"], p["stem_zero_bias"])
    y = y.reshape(B, Ho, Wo, 64)
    y = groupnorm_relu(y, p["stem_gn_g"], p["stem_gn_b"], groups=32)
    return maxpool_3x3_s2_same(y)


def patch_embed(x, p, patch=8):
    B, H, W, C = x.shape
    nH, nW = H // patch, W // patch
    x = x[:, :nH * patch, :nW * patch, :]
    x = x.reshape(B, nH, patch, nW, patch, C)
    x = x.transpose(0, 1, 3, 2, 4, 5).reshape(B * nH * nW, patch * patch * C)
    tok = fused_matmul(x, p["patch_w"], p["patch_b"])
    return tok.reshape(B, nH * nW, -1)


def vit_block(x2d, B, T, blk, num_heads=3):
    D = x2d.shape[1]
    Dh = D // num_heads
    # LN1 fused as prologue of the qkv projection
    qkv = fused_matmul(x2d, blk["qkv_w"], blk["qkv_b"],
                       ln=(blk["ln1_g"], blk["ln1_b"]))                  # (B*T, 3D)
    qkv = qkv.reshape(B, T, 3, num_heads, Dh).transpose(2, 0, 3, 1, 4)   # (3,B,H,T,Dh)
    q = qkv[0].reshape(B * num_heads, T, Dh)
    k = qkv[1].reshape(B * num_heads, T, Dh)
    v = qkv[2].reshape(B * num_heads, T, Dh)
    o = attention(q, k, v, Dh ** -0.5)                                   # (B*H, T, Dh)
    o = o.reshape(B, num_heads, T, Dh).transpose(0, 2, 1, 3).reshape(B * T, D)
    # attention out-proj + residual fused
    x2d = fused_matmul(o, blk["proj_w"], blk["proj_b"], residual=x2d)
    # LN2 + fc1 + GELU fused, then fc2 + residual fused
    h = fused_matmul(x2d, blk["fc1_w"], blk["fc1_b"],
                     ln=(blk["ln2_g"], blk["ln2_b"]), activation="gelu")
    x2d = fused_matmul(h, blk["fc2_w"], blk["fc2_b"], residual=x2d)
    return x2d


def vit_tiny_forward(params, x_nchw):
    x = jnp.transpose(x_nchw, (0, 2, 3, 1)).astype(jnp.float32)   # NCHW -> NHWC
    B = x.shape[0]
    x = stem(x, params)
    tok = patch_embed(x, params)                                  # (B, N, D)
    D = tok.shape[-1]
    cls = jnp.broadcast_to(params["cls"], (B, 1, D))
    tok = jnp.concatenate([cls, tok], axis=1) + params["pos"]
    # TODO(synk): drop_rate=0.1 dropout (pos/proj/mlp) is stochastic in train mode; it is
    # implemented here as identity (inference behaviour).
    T = tok.shape[1]
    x2d = tok.reshape(B * T, D)
    for blk in params["blocks"]:
        x2d = vit_block(x2d, B, T, blk)
    cls_tok = x2d.reshape(B, T, D)[:, 0, :]                       # (B, D)
    # final LayerNorm + head(192->1000) + the shared ReLU of the task heads, all fused
    feats = fused_matmul(cls_tok, params["head_w"], params["head_b"],
                         ln=(params["norm_g"], params["norm_b"]),
                         activation="relu")                       # (B, 1000)
    # three task heads fused into one matmul: N = 3 + 2 + 3
    logits = fused_matmul(feats, params["heads_w"], params["heads_b"])
    mask, gender, age = logits[:, 0:3], logits[:, 3:5], logits[:, 5:8]
    return mask, gender, age


# ---------------------------------------------------------------------------
# Parameters (random init; pretrained ImageNet weights cannot be downloaded)
# ---------------------------------------------------------------------------
class _KeyGen:
    def __init__(self, key):
        self.key = key

    def __call__(self):
        self.key, sub = jax.random.split(self.key)
        return sub


def _rand(key, shape, scale=0.02):
    return scale * jax.random.normal(key, shape, dtype=jnp.float32)


def make_vit_tiny_params(kg, img_size, depth=12, dim=192, num_heads=3,
                         mlp_ratio=4, num_classes=1000):
    # stem: weight-standardized 7x7 conv (StdConv2dSame), stored in matmul layout, bf16
    w = _rand(kg(), (7, 7, 3, 64))
    mean = jnp.mean(w, axis=(0, 1, 2), keepdims=True)
    var = jnp.var(w, axis=(0, 1, 2), keepdims=True)
    w = (w - mean) * lax.rsqrt(var + _WS_EPS)
    p = {
        "stem_w": w.reshape(7 * 7 * 3, 64).astype(jnp.bfloat16),
        "stem_zero_bias": jnp.zeros((64,), jnp.float32),
        "stem_gn_g": jnp.ones((64,), jnp.float32),
        "stem_gn_b": jnp.zeros((64,), jnp.float32),
        "patch_w": _rand(kg(), (8 * 8 * 64, dim)).astype(jnp.bfloat16),
        "patch_b": jnp.zeros((dim,), jnp.float32),
    }
    hs = -(-img_size // 2)          # after stem conv (same, stride 2)
    hp = -(-hs // 2)                # after max-pool (same, stride 2)
    n_patch = (hp // 8) ** 2
    p["cls"] = _rand(kg(), (1, 1, dim))
    p["pos"] = _rand(kg(), (1, n_patch + 1, dim))
    hidden = dim * mlp_ratio
    blocks = []
    for _ in range(depth):
        blocks.append({
            "ln1_g": jnp.ones((dim,), jnp.float32),
            "ln1_b": jnp.zeros((dim,), jnp.float32),
            "qkv_w": _rand(kg(), (dim, 3 * dim)).astype(jnp.bfloat16),
            "qkv_b": jnp.zeros((3 * dim,), jnp.float32),
            "proj_w": _rand(kg(), (dim, dim)).astype(jnp.bfloat16),
            "proj_b": jnp.zeros((dim,), jnp.float32),
            "ln2_g": jnp.ones((dim,), jnp.float32),
            "ln2_b": jnp.zeros((dim,), jnp.float32),
            "fc1_w": _rand(kg(), (dim, hidden)).astype(jnp.bfloat16),
            "fc1_b": jnp.zeros((hidden,), jnp.float32),
            "fc2_w": _rand(kg(), (hidden, dim)).astype(jnp.bfloat16),
            "fc2_b": jnp.zeros((dim,), jnp.float32),
        })
    p["blocks"] = blocks
    p["norm_g"] = jnp.ones((dim,), jnp.float32)
    p["norm_b"] = jnp.zeros((dim,), jnp.float32)
    p["head_w"] = _rand(kg(), (dim, num_classes)).astype(jnp.bfloat16)
    p["head_b"] = jnp.zeros((num_classes,), jnp.float32)
    # three task heads (mask=3, gender=2, age=3) concatenated along N for one fused matmul
    mask_w = _rand(kg(), (num_classes, 3))
    gender_w = _rand(kg(), (num_classes, 2))
    age_w = _rand(kg(), (num_classes, 3))
    p["heads_w"] = jnp.concatenate([mask_w, gender_w, age_w], axis=1).astype(jnp.bfloat16)
    p["heads_b"] = jnp.zeros((8,), jnp.float32)
    return p


if __name__ == "__main__":
    key = jax.random.PRNGKey(0)
    kg = _KeyGen(key)
    # Small-but-valid input: batch=2, 3 channels, 96x96 (stem/2 -> pool/2 -> patch8 => 3x3=9
    # patches + cls = 10 tokens). TODO(synk): pretrained=True weights are not loadable
    # offline; architecture-identical random weights are used instead.
    x = jax.random.normal(kg(), (2, 3, 96, 96), dtype=jnp.float32)
    params = make_vit_tiny_params(kg, img_size=96)

    mask, gender, age = vit_tiny_forward(params, x)
    jax.block_until_ready((mask, gender, age))

    assert mask.shape == (2, 3)
    assert gender.shape == (2, 2)
    assert age.shape == (2, 3)
    print("KERNEL_OK")
</pallas_src>

<mosaic_0001>
module attributes {stable_mosaic.version = 11 : i64} {
  func.func @kernel(%arg0: i32, %arg1: i32, %arg2: memref<512x147xbf16, #tpu.memory_space<vmem>>, %arg3: memref<147x64xbf16, #tpu.memory_space<vmem>>, %arg4: memref<1x64xf32, #tpu.memory_space<vmem>>, %arg5: memref<512x64xf32, #tpu.memory_space<vmem>>) attributes {dimension_semantics = [#tpu.dimension_semantics<parallel>, #tpu.dimension_semantics<arbitrary>], iteration_bounds = array<i64: 9, 1>, scalar_prefetch = 0 : i64, scratch_operands = 0 : i64, tpu.core_type = #tpu.core_type<tc>, window_params = [{transform_indices = @transform_0, window_bounds = array<i64: 512, 147>}, {transform_indices = @transform_1, window_bounds = array<i64: 147, 64>}, {pipeline_mode = #tpu.pipeline_mode<synchronous>, transform_indices = @transform_2, window_bounds = array<i64: 1, 64>}, {transform_indices = @transform_3, window_bounds = array<i64: 512, 64>}]} {
    %c0 = arith.constant 0 : index
    %c0_0 = arith.constant 0 : index
    %0 = vector.load %arg2[%c0, %c0_0] : memref<512x147xbf16, #tpu.memory_space<vmem>>, vector<512x147xbf16>
    %c0_1 = arith.constant 0 : index
    %c0_2 = arith.constant 0 : index
    %1 = vector.load %arg3[%c0_1, %c0_2] : memref<147x64xbf16, #tpu.memory_space<vmem>>, vector<147x64xbf16>
    %cst = arith.constant dense<0.000000e+00> : vector<512x64xf32>
    %2 = tpu.matmul %0, %1, %cst {dimension_numbers = #tpu.dot_dimension_numbers<[1], [0], [0], [1], [0, 0, 1, 1], [], []>} : vector<512x147xbf16>, vector<147x64xbf16>, vector<512x64xf32> -> vector<512x64xf32>
    %c0_3 = arith.constant 0 : index
    %c0_4 = arith.constant 0 : index
    %3 = vector.load %arg4[%c0_3, %c0_4] : memref<1x64xf32, #tpu.memory_space<vmem>>, vector<1x64xf32>
    %4 = vector.broadcast %3 : vector<1x64xf32> to vector<512x64xf32>
    %5 = arith.addf %2, %4 : vector<512x64xf32>
    %c0_5 = arith.constant 0 : index
    %c0_6 = arith.constant 0 : index
    %6 = vector.load %arg5[%c0_5, %c0_6] : memref<512x64xf32, #tpu.memory_space<vmem>>, vector<512x64xf32>
    tpu.vector_store %arg5[%c0_5, %c0_6], %5 {strides = array<i32>} : memref<512x64xf32, #tpu.memory_space<vmem>>, vector<512x64xf32>,
    return
  }
  func.func @transform_0(%arg0: i32, %arg1: i32) -> (i32, i32) {
    %c0_i32 = arith.constant 0 : i32
    return %arg0, %arg1 : i32, i32
  }
  func.func @transform_1(%arg0: i32, %arg1: i32) -> (i32, i32) {
    %c0_i32 = arith.constant 0 : i32
    %c0_i32_0 = arith.constant 0 : i32
    return %arg1, %c0_i32 : i32, i32
  }
  func.func @transform_2(%arg0: i32, %arg1: i32) -> (i32, i32) {
    %c0_i32 = arith.constant 0 : i32
    %c0_i32_0 = arith.constant 0 : i32
    %c0_i32_1 = arith.constant 0 : i32
    return %c0_i32, %c0_i32_0 : i32, i32
  }
  func.func @transform_3(%arg0: i32, %arg1: i32) -> (i32, i32) {
    %c0_i32 = arith.constant 0 : i32
    %c0_i32_0 = arith.constant 0 : i32
    return %arg0, %c0_i32 : i32, i32
  }
}

</mosaic_0001>

<bundles_post_ra>
// kernel: tpu_custom_call.1
= control target key start
LH: loop header
LB: loop body
LE: loop exit
PB: predicated region body
PF: predicated region fallthrough
CT: control target
= control target key end

     0   :  { %s1526_s12 = smov 0   ;;  %s1528_s13 = smov 0   ;;  %s1893_s0 = inlined_call_operand.vmem [shape: bf16[4608,147], index: 0, kind: input, shape index: {}]   ;;  %s1894_s1 = inlined_call_operand.vmem [shape: bf16[147,64], index: 1, kind: input, shape index: {}]   ;;  %s1895_s2 = inlined_call_operand.vmem [shape: f32[1,64], index: 2, kind: input, shape index: {}]   ;;  %s1896_s3 = inlined_call_operand.vmem [shape: f32[4608,64], index: 3, kind: output, shape index: {}]  }
   0x1   :  { %s1530_s14 = smov 0  }
   0x2 LB: > { %s25_s15 = sadd.s32 1, %s1498_s13  ;;  %p1212_p0 = scmp.ge.s32.totalorder %s1502_s14, 1  ;;  %s1502_s14 = sphi %s1530_s14, %s13_s14   ;;  %s1498_s13 = sphi %s1528_s13, %s1898_s13   ;;  %s1494_s12 = sphi %s1526_s12, %s1897_s12  }
   0x3   : > { %p27_p1 = scmp.ge.s32.totalorder %s25_s15, 9  ;;  %p169_p2 = scmp.lt.s32.totalorder %s1502_s14, 10 }
   0x5   : > { %s1900_s15 = smov (%p27_p1, %s25_s15), 0  ;;  %p170_p3 = pnand %p1212_p0, %p169_p2 }
   0x6   : > { %v1374_v0 = vld [vmem:[%s1894_s1] sm:$0xff] (!%p170_p3)   ;;  %v1504_v1 = vmov (!%p170_p3), 0   ;;  %v1375_v2 = vld [vmem:[%s1894_s1 + $0x8] sm:$0xff] (!%p170_p3)   ;;  %v1376_v3 = vld [vmem:[%s1894_s1 + $0x10] sm:$0xff] (!%p170_p3)   ;;  %s1213_s22 = sshll.u32 (!%p170_p3), %s1494_s12, 6  ;;  %vm663_vm0 = vcmask (!%p170_p3), 154624  }
   0x7   : > { %173 = sbr.rel (%p170_p3) target bundleno = 384 (0x180), region = 32  ;;  %767 = vmatprep.subr.bf16.mxu0 (!%p170_p3), %v1504_v1  ;;  %1328 = vmatprep.subr.bf16.mxu1 (!%p170_p3), %v1504_v1  ;;  %p205_p4 = scmp.lt.s32.totalorder (!%p170_p3), %s1213_s22, 575  ;;  %v1377_v4 = vld [vmem:[%s1894_s1 + $0x18] sm:$0xff] (!%p170_p3)   ;;  %v1378_v5 = vld [vmem:[%s1894_s1 + $0x20] sm:$0xff] (!%p170_p3)   ;;  %v1379_v8 = vld [vmem:[%s1894_s1 + $0x28] sm:$0xff] (!%p170_p3)   ;;  %vm760_vm1 = vcmask (!%p170_p3), 1040384  }
   0x8   : > { %768 = vmatpush1.bf16.msra.mxu0 (!%p170_p3), %v1374_v0  ;;  %1338 = vmatpush1.bf16.msra.mxu1 (!%p170_p3), %v1374_v0  ;;  %v1380_v9 = vld [vmem:[%s1894_s1 + $0x30] sm:$0xff] (!%p170_p3)   ;;  %v1381_v10 = vld [vmem:[%s1894_s1 + $0x38] sm:$0xff] (!%p170_p3)   ;;  %vm761_vm2 = vcmask (!%p170_p3), 1041408   ;;  %v1505_v11 = vmov (!%p170_p3), 65535   ;;  %v1382_v13 = vld [vmem:[%s1894_s1 + $0x40] sm:$0xff] (!%p170_p3)   ;;  %vm1056_vm3 = vcmask (!%p170_p3), 523264  }
   0x9   : > { %769 = vmatprep.subr.bf16.mxu0 (!%p170_p3), %v1504_v1  ;;  %1329 = vmatprep.subr.bf16.mxu1 (!%p170_p3), %v1504_v1  ;;  %v762_v12 = vsel (!%p170_p3), %vm760_vm1, 4294967295, %v1505_v11  ;;  %v1383_v14 = vld [vmem:[%s1894_s1 + $0x48] ss:$0 sps:$4 sm:$0x33] (!%p170_p3)  }
   0xa   : > { %v763_v15 = vsel (!%p170_p3), %vm761_vm2, %v762_v12, 0 }
   0xb   : > { %v765_v16 = vand.u32 (!%p170_p3), %v1383_v14, %v763_v15  ;;  %v1683_v15 = vld [vmem:[%s1895_s2] ss:$0 sm:$0xff] (!%p170_p3) }
   0xc   : > { %770 = vmatpush1.bf16.msra.mxu0 (!%p170_p3), %v1375_v2  ;;  %1339 = vmatpush1.bf16.msra.mxu1 (!%p170_p3), %v1375_v2 }
   0xd   : > { %771 = vmatprep.subr.bf16.mxu0 (!%p170_p3), %v1504_v1  ;;  %1330 = vmatprep.subr.bf16.mxu1 (!%p170_p3), %v1504_v1 }
   0xe   : > { %s1902_s22 = smov (!%p205_p4, %s1213_s22), 575 }
   0xf   : > { %s1327_s25 = sshll.u32 %s1902_s22, 3 }
  0x10   : > { %772 = vmatpush1.bf16.msra.mxu0 %v1376_v3  ;;  %1340 = vmatpush1.bf16.msra.mxu1 %v1376_v3  ;;  %s1564_s28 = scalar_lea.vmem %s1893_s0, %s1327_s25  ;;  %s1690_s21 = scalar_lea.vmem %s1896_s3, %s1327_s25 }
  0x11   : > { %773 = vmatprep.subr.bf16.mxu0 %v1504_v1  ;;  %1331 = vmatprep.subr.bf16.mxu1 %v1504_v1  ;;  %v1386_v6 = vld [vmem:[%s1564_s28 + $0x4] ss:$8 sps:$4 sm:$0xff]   ;;  %v1384_v17 = vld [vmem:[%s1564_s28] ss:$8 sps:$4 sm:$0xff]   ;;  %v1390_v19 = vld [vmem:[%s1564_s28 + $0x14] ss:$8 sps:$4 sm:$0xff]  }
  0x12   : > { %v1389_v7 = vld [vmem:[%s1564_s28 + $0x104] ss:$8 sps:$4 sm:$0xff]   ;;  %1293 = vmatprep.mubr.msk.bf16.mxu0 %vm663_vm0, %v1386_v6  ;;  %v1387_v18 = vld [vmem:[%s1564_s28 + $0x100] ss:$8 sps:$4 sm:$0xff]   ;;  %v1392_v20 = vld [vmem:[%s1564_s28 + $0x114] ss:$8 sps:$4 sm:$0xff]  }
  0x13   : > { %1309 = vmatprep.mubr.msk.bf16.mxu1 %vm663_vm0, %v1389_v7  ;;  %v1394_v21 = vld [vmem:[%s1564_s28 + $0x10] ss:$8 sps:$4 sm:$0xff]   ;;  %v1396_v23 = vld [vmem:[%s1564_s28 + $0x24] ss:$8 sps:$4 sm:$0xff]   ;;  %v1400_v25 = vld [vmem:[%s1564_s28 + $0x20] ss:$8 sps:$4 sm:$0xff]  }
  0x14   : > { %774 = vmatpush1.bf16.msra.mxu0 %v1377_v4  ;;  %1341 = vmatpush1.bf16.msra.mxu1 %v1377_v4  ;;  %v1395_v22 = vld [vmem:[%s1564_s28 + $0x110] ss:$8 sps:$4 sm:$0xff]   ;;  %v1398_v24 = vld [vmem:[%s1564_s28 + $0x124] ss:$8 sps:$4 sm:$0xff]   ;;  %v1401_v26 = vld [vmem:[%s1564_s28 + $0x120] ss:$8 sps:$4 sm:$0xff]  }
  0x15   : > { %775 = vmatprep.subr.bf16.mxu0 %v1504_v1  ;;  %1332 = vmatprep.subr.bf16.mxu1 %v1504_v1  ;;  %v1402_v27 = vld [vmem:[%s1564_s28 + $0x34] ss:$8 sps:$4 sm:$0xff]   ;;  %v1406_v29 = vld [vmem:[%s1564_s28 + $0x30] ss:$8 sps:$4 sm:$0xff]   ;;  %v1408_v31 = vld [vmem:[%s1564_s28 + $0x44] ss:$8 sps:$4 sm:$0xff]  }
  0x16   : > { %v1404_v28 = vld [vmem:[%s1564_s28 + $0x134] ss:$8 sps:$4 sm:$0xff]   ;;  %v1407_v30 = vld [vmem:[%s1564_s28 + $0x130] ss:$8 sps:$4 sm:$0xff]   ;;  %v1410_v32 = vld [vmem:[%s1564_s28 + $0x144] ss:$8 sps:$4 sm:$0xff]  }
  0x17   : > { %v1412_v33 = vld [vmem:[%s1564_s28 + $0x40] ss:$8 sps:$4 sm:$0xff]   ;;  %v1414_v35 = vld [vmem:[%s1564_s28 + $0x54] ss:$8 sps:$4 sm:$0xff]   ;;  %v1418_v37 = vld [vmem:[%s1564_s28 + $0x50] ss:$8 sps:$4 sm:$0xff]  }
  0x18   : > { %776 = vmatpush1.bf16.msra.mxu0 %v1378_v5  ;;  %1342 = vmatpush1.bf16.msra.mxu1 %v1378_v5  ;;  %v1413_v34 = vld [vmem:[%s1564_s28 + $0x140] ss:$8 sps:$4 sm:$0xff]   ;;  %v1416_v36 = vld [vmem:[%s1564_s28 + $0x154] ss:$8 sps:$4 sm:$0xff]   ;;  %v1419_v38 = vld [vmem:[%s1564_s28 + $0x150] ss:$8 sps:$4 sm:$0xff]  }
  0x19   : > { %777 = vmatprep.subr.bf16.mxu0 %v1504_v1  ;;  %1333 = vmatprep.subr.bf16.mxu1 %v1504_v1  ;;  %v1420_v39 = vld [vmem:[%s1564_s28 + $0x64] ss:$8 sps:$4 sm:$0xff]   ;;  %v1424_v41 = vld [vmem:[%s1564_s28 + $0x60] ss:$8 sps:$4 sm:$0xff]   ;;  %v1426_v43 = vld [vmem:[%s1564_s28 + $0x74] ss:$8 sps:$4 sm:$0xff]  }
  0x1a   : > { %v1422_v40 = vld [vmem:[%s1564_s28 + $0x164] ss:$8 sps:$4 sm:$0xff]   ;;  %v1425_v42 = vld [vmem:[%s1564_s28 + $0x160] ss:$8 sps:$4 sm:$0xff]   ;;  %v1428_v44 = vld [vmem:[%s1564_s28 + $0x174] ss:$8 sps:$4 sm:$0xff]  }
  0x1b   : > { %v1430_v45 = vld [vmem:[%s1564_s28 + $0x70] ss:$8 sps:$4 sm:$0xff]   ;;  %v1432_v47 = vld [vmem:[%s1564_s28 + $0x84] ss:$8 sps:$4 sm:$0xff]   ;;  %v1436_v49 = vld [vmem:[%s1564_s28 + $0x80] ss:$8 sps:$4 sm:$0xff]  }
  0x1c   : > { %778 = vmatpush1.bf16.msra.mxu0 %v1379_v8  ;;  %1343 = vmatpush1.bf16.msra.mxu1 %v1379_v8  ;;  %v1431_v46 = vld [vmem:[%s1564_s28 + $0x170] ss:$8 sps:$4 sm:$0xff]   ;;  %v1434_v48 = vld [vmem:[%s1564_s28 + $0x184] ss:$8 sps:$4 sm:$0xff]   ;;  %v1437_v50 = vld [vmem:[%s1564_s28 + $0x180] ss:$8 sps:$4 sm:$0xff]  }
  0x1d   : > { %779 = vmatprep.subr.bf16.mxu0 %v1504_v1  ;;  %1334 = vmatprep.subr.bf16.mxu1 %v1504_v1  ;;  %v1438_v51 = vld [vmem:[%s1564_s28 + $0x94] ss:$8 sps:$4 sm:$0xff]   ;;  %v1442_v53 = vld [vmem:[%s1564_s28 + $0x90] ss:$8 sps:$4 sm:$0xff]   ;;  %v1444_v55 = vld [vmem:[%s1564_s28 + $0xa4] ss:$8 sps:$4 sm:$0xff]  }
  0x1e   : > { %v1440_v52 = vld [vmem:[%s1564_s28 + $0x194] ss:$8 sps:$4 sm:$0xff]   ;;  %v1443_v54 = vld [vmem:[%s1564_s28 + $0x190] ss:$8 sps:$4 sm:$0xff]   ;;  %v1446_v56 = vld [vmem:[%s1564_s28 + $0x1a4] ss:$8 sps:$4 sm:$0xff]  }
  0x1f   : > { %v1448_v57 = vld [vmem:[%s1564_s28 + $0xa0] ss:$8 sps:$4 sm:$0xff]   ;;  %v1450_v59 = vld [vmem:[%s1564_s28 + $0xb4] ss:$8 sps:$4 sm:$0xff]   ;;  %v1454_v61 = vld [vmem:[%s1564_s28 + $0xb0] ss:$8 sps:$4 sm:$0xff]  }
  0x20   : > { %780 = vmatpush1.bf16.msra.mxu0 %v1380_v9  ;;  %1344 = vmatpush1.bf16.msra.mxu1 %v1380_v9  ;;  %v1449_v58 = vld [vmem:[%s1564_s28 + $0x1a0] ss:$8 sps:$4 sm:$0xff]   ;;  %v1452_v60 = vld [vmem:[%s1564_s28 + $0x1b4] ss:$8 sps:$4 sm:$0xff]   ;;  %v1455_v62 = vld [vmem:[%s1564_s28 + $0x1b0] ss:$8 sps:$4 sm:$0xff]  }
  0x21   : > { %781 = vmatprep.subr.bf16.mxu0 %v1504_v1  ;;  %1335 = vmatprep.subr.bf16.mxu1 %v1504_v1  ;;  %v1456_v63 = vld [vmem:[%s1564_s28 + $0xc4] ss:$8 sps:$4 sm:$0xff]   ;;  %v1461_v2 = vld [vmem:[%s1564_s28 + $0x1c0] ss:$8 sps:$4 sm:$0xff]   ;;  %v1462_v3 = vld [vmem:[%s1564_s28 + $0xd4] ss:$8 sps:$4 sm:$0xff]  }
  0x22   : > { %v1458_v0 = vld [vmem:[%s1564_s28 + $0x1c4] ss:$8 sps:$4 sm:$0xff]   ;;  %v1464_v4 = vld [vmem:[%s1564_s28 + $0x1d4] ss:$8 sps:$4 sm:$0xff]   ;;  %v1466_v5 = vld [vmem:[%s1564_s28 + $0xd0] ss:$8 sps:$4 sm:$0xff]  }
  0x23   : > { %v1467_v6 = vld [vmem:[%s1564_s28 + $0x1d0] ss:$8 sps:$4 sm:$0xff]   ;;  %v1468_v7 = vld [vmem:[%s1564_s28 + $0xe4] ss:$8 sps:$4 sm:$0xff]   ;;  %v1472_v9 = vld [vmem:[%s1564_s28 + $0xe0] ss:$8 sps:$4 sm:$0xff]  }
  0x24   : > { %782 = vmatpush1.bf16.msra.mxu0 %v1381_v10  ;;  %1345 = vmatpush1.bf16.msra.mxu1 %v1381_v10  ;;  %v1470_v8 = vld [vmem:[%s1564_s28 + $0x1e4] ss:$8 sps:$4 sm:$0xff]   ;;  %v1473_v10 = vld [vmem:[%s1564_s28 + $0x1e0] ss:$8 sps:$4 sm:$0xff]   ;;  %v1474_v11 = vld [vmem:[%s1564_s28 + $0xf4] ss:$8 sps:$4 sm:$0xff]  }
  0x25   : > { %783 = vmatprep.subr.bf16.mxu0 %v1504_v1  ;;  %1336 = vmatprep.subr.bf16.mxu1 %v1504_v1  ;;  %v1476_v12 = vld [vmem:[%s1564_s28 + $0x1f4] ss:$8 sps:$4 sm:$0xff]   ;;  %v1479_v14 = vld [vmem:[%s1564_s28 + $0x1f0] ss:$8 sps:$4 sm:$0xff]  }
  0x28   : > { %784 = vmatpush1.bf16.msra.mxu0 %v1382_v13  ;;  %1346 = vmatpush1.bf16.msra.mxu1 %v1382_v13  ;;  %v1478_v13 = vld [vmem:[%s1564_s28 + $0xf0] ss:$8 sps:$4 sm:$0xff]  }
  0x29   : > { %785 = vmatprep.subr.bf16.mxu0 %v1504_v1  ;;  %1337 = vmatprep.subr.bf16.mxu1 %v1504_v1  ;;  %v1460_v1 = vld [vmem:[%s1564_s28 + $0xc0] ss:$8 sps:$4 sm:$0xff]  }
  0x2c   : > { %786 = vmatpush1.bf16.msra.mxu0 %v765_v16  ;;  %1347 = vmatpush1.bf16.msra.mxu1 %v765_v16 }
  0x2f   : > { %800 = vmatmul.mubr.bf16.vlgmr.msra.gmra.mrb[0].mxu0 %v1384_v17  ;;  %928 = vmatmul.mubr.bf16.vlgmr.msra.gmra.mrb[0].mxu1 %v1387_v18 }
  0x30   : > { %1294 = vmatprep.mubr.msk.bf16.mxu0 %vm663_vm0, %v1390_v19  ;;  %1310 = vmatprep.mubr.msk.bf16.mxu1 %vm663_vm0, %v1392_v20 }
  0x37   : > { %808 = vmatmul.mubr.bf16.gmra.mrb[4].mxu0 %v1394_v21  ;;  %936 = vmatmul.mubr.bf16.gmra.mrb[4].mxu1 %v1395_v22 }
  0x38   : > { %1295 = vmatprep.mubr.msk.bf16.mxu0 %vm663_vm0, %v1396_v23  ;;  %1311 = vmatprep.mubr.msk.bf16.mxu1 %vm663_vm0, %v1398_v24 }
  0x3f   : > { %816 = vmatmul.mubr.bf16.gmra.mrb[8].mxu0 %v1400_v25  ;;  %944 = vmatmul.mubr.bf16.gmra.mrb[8].mxu1 %v1401_v26 }
  0x40   : > { %1296 = vmatprep.mubr.msk.bf16.mxu0 %vm663_vm0, %v1402_v27  ;;  %1312 = vmatprep.mubr.msk.bf16.mxu1 %vm663_vm0, %v1404_v28 }
  0x47   : > { %824 = vmatmul.mubr.bf16.gmra.mrb[12].mxu0 %v1406_v29  ;;  %952 = vmatmul.mubr.bf16.gmra.mrb[12].mxu1 %v1407_v30 }
  0x48   : > { %1297 = vmatprep.mubr.msk.bf16.mxu0 %vm663_vm0, %v1408_v31  ;;  %1313 = vmatprep.mubr.msk.bf16.mxu1 %vm663_vm0, %v1410_v32 }
  0x4f   : > { %832 = vmatmul.mubr.bf16.gmra.mrb[16].mxu0 %v1412_v33  ;;  %960 = vmatmul.mubr.bf16.gmra.mrb[16].mxu1 %v1413_v34 }
  0x50   : > { %1298 = vmatprep.mubr.msk.bf16.mxu0 %vm663_vm0, %v1414_v35  ;;  %1314 = vmatprep.mubr.msk.bf16.mxu1 %vm663_vm0, %v1416_v36 }
  0x57   : > { %840 = vmatmul.mubr.bf16.gmra.mrb[20].mxu0 %v1418_v37  ;;  %968 = vmatmul.mubr.bf16.gmra.mrb[20].mxu1 %v1419_v38 }
  0x58   : > { %1299 = vmatprep.mubr.msk.bf16.mxu0 %vm663_vm0, %v1420_v39  ;;  %1315 = vmatprep.mubr.msk.bf16.mxu1 %vm663_vm0, %v1422_v40 }
  0x5f   : > { %848 = vmatmul.mubr.bf16.gmra.mrb[24].mxu0 %v1424_v41  ;;  %976 = vmatmul.mubr.bf16.gmra.mrb[24].mxu1 %v1425_v42 }
  0x60   : > { %1300 = vmatprep.mubr.msk.bf16.mxu0 %vm663_vm0, %v1426_v43  ;;  %1316 = vmatprep.mubr.msk.bf16.mxu1 %vm663_vm0, %v1428_v44 }
  0x67   : > { %856 = vmatmul.mubr.bf16.gmra.mrb[28].mxu0 %v1430_v45  ;;  %984 = vmatmul.mubr.bf16.gmra.mrb[28].mxu1 %v1431_v46 }
  0x68   : > { %1301 = vmatprep.mubr.msk.bf16.mxu0 %vm663_vm0, %v1432_v47  ;;  %1317 = vmatprep.mubr.msk.bf16.mxu1 %vm663_vm0, %v1434_v48 }
  0x6f   : > { %864 = vmatmul.mubr.bf16.gmra.mrb[32].mxu0 %v1436_v49  ;;  %992 = vmatmul.mubr.bf16.gmra.mrb[32].mxu1 %v1437_v50 }
  0x70   : > { %1302 = vmatprep.mubr.msk.bf16.mxu0 %vm663_vm0, %v1438_v51  ;;  %1318 = vmatprep.mubr.msk.bf16.mxu1 %vm663_vm0, %v1440_v52 }
  0x77   : > { %872 = vmatmul.mubr.bf16.gmra.mrb[36].mxu0 %v1442_v53  ;;  %1000 = vmatmul.mubr.bf16.gmra.mrb[36].mxu1 %v1443_v54 }
  0x78   : > { %1303 = vmatprep.mubr.msk.bf16.mxu0 %vm663_vm0, %v1444_v55  ;;  %1319 = vmatprep.mubr.msk.bf16.mxu1 %vm663_vm0, %v1446_v56 }
  0x7f   : > { %880 = vmatmul.mubr.bf16.gmra.mrb[40].mxu0 %v1448_v57  ;;  %1008 = vmatmul.mubr.bf16.gmra.mrb[40].mxu1 %v1449_v58 }
  0x80   : > { %1304 = vmatprep.mubr.msk.bf16.mxu0 %vm663_vm0, %v1450_v59  ;;  %1320 = vmatprep.mubr.msk.bf16.mxu1 %vm663_vm0, %v1452_v60 }
  0x87   : > { %888 = vmatmul.mubr.bf16.gmra.mrb[44].mxu0 %v1454_v61  ;;  %1016 = vmatmul.mubr.bf16.gmra.mrb[44].mxu1 %v1455_v62 }
  0x88   : > { %1305 = vmatprep.mubr.msk.bf16.mxu0 %vm663_vm0, %v1456_v63  ;;  %1321 = vmatprep.mubr.msk.bf16.mxu1 %vm663_vm0, %v1458_v0 }
  0x8f   : > { %896 = vmatmul.mubr.bf16.gmra.mrb[48].mxu0 %v1460_v1  ;;  %1024 = vmatmul.mubr.bf16.gmra.mrb[48].mxu1 %v1461_v2 }
  0x90   : > { %1306 = vmatprep.mubr.msk.bf16.mxu0 %vm663_vm0, %v1462_v3  ;;  %1322 = vmatprep.mubr.msk.bf16.mxu1 %vm663_vm0, %v1464_v4 }
  0x97   : > { %904 = vmatmul.mubr.bf16.gmra.mrb[52].mxu0 %v1466_v5  ;;  %1032 = vmatmul.mubr.bf16.gmra.mrb[52].mxu1 %v1467_v6 }
  0x98   : > { %1307 = vmatprep.mubr.msk.bf16.mxu0 %vm663_vm0, %v1468_v7  ;;  %1323 = vmatprep.mubr.msk.bf16.mxu1 %vm663_vm0, %v1470_v8 }
  0x9f   : > { %912 = vmatmul.mubr.bf16.gmra.mrb[56].mxu0 %v1472_v9  ;;  %1040 = vmatmul.mubr.bf16.gmra.mrb[56].mxu1 %v1473_v10 }
  0xa0   : > { %1308 = vmatprep.mubr.msk.bf16.mxu0 %vm663_vm0, %v1474_v11  ;;  %1324 = vmatprep.mubr.msk.bf16.mxu1 %vm663_vm0, %v1476_v12 }
  0xa7   : > { %920 = vmatmul.mubr.bf16.gmra.mrb[60].mxu0 %v1478_v13  ;;  %1048 = vmatmul.mubr.bf16.gmra.mrb[60].mxu1 %v1479_v14 }
 0x102   : > { %v801_v16 = vpop.f32.mrb[0].mxu0  ;;  %v929_v17 = vpop.f32.mrb[0].mxu1 }
 0x103   : > { %v802_v18 = vadd.f32 %v1683_v15, %v801_v16  ;;  %v930_v19 = vadd.f32 %v1683_v15, %v929_v17  ;;  %v803_v20 = vpop.f32.mrb[1].mxu0  ;;  %v931_v21 = vpop.f32.mrb[1].mxu1 }
 0x104   : > { %v804_v22 = vpop.f32.mrb[2].mxu0  ;;  %v932_v23 = vpop.f32.mrb[2].mxu1 }
 0x105   : > { %1057 = vst.msk [vmem:[%s1690_s21] sm:$0xff] %vm1056_vm3, %v802_v18  ;;  %1089 = vst.msk [vmem:[%s1690_s21 + $0x100] sm:$0xff] %vm1056_vm3, %v930_v19  ;;  %v805_v24 = vadd.f32 %v1683_v15, %v804_v22  ;;  %v933_v25 = vadd.f32 %v1683_v15, %v932_v23  ;;  %v806_v26 = vpop.f32.mrb[3].mxu0  ;;  %v934_v27 = vpop.f32.mrb[3].mxu1 }
 0x107   : > { %1058 = vst.msk [vmem:[%s1690_s21 + $0x8] sm:$0xff] %vm1056_vm3, %v805_v24  ;;  %1090 = vst.msk [vmem:[%s1690_s21 + $0x108] sm:$0xff] %vm1056_vm3, %v933_v25 }
 0x10a   : > { %v809_v28 = vpop.f32.mrb[4].mxu0  ;;  %v937_v29 = vpop.f32.mrb[4].mxu1 }
 0x10b   : > { %v810_v30 = vadd.f32 %v1683_v15, %v809_v28  ;;  %v938_v31 = vadd.f32 %v1683_v15, %v937_v29  ;;  %v811_v32 = vpop.f32.mrb[5].mxu0  ;;  %v939_v33 = vpop.f32.mrb[5].mxu1 }
 0x10c   : > { %v812_v34 = vpop.f32.mrb[6].mxu0  ;;  %v940_v35 = vpop.f32.mrb[6].mxu1 }
 0x10d   : > { %1059 = vst.msk [vmem:[%s1690_s21 + $0x10] sm:$0xff] %vm1056_vm3, %v810_v30  ;;  %1091 = vst.msk [vmem:[%s1690_s21 + $0x110] sm:$0xff] %vm1056_vm3, %v938_v31  ;;  %v813_v36 = vadd.f32 %v1683_v15, %v812_v34  ;;  %v941_v37 = vadd.f32 %v1683_v15, %v940_v35  ;;  %v814_v38 = vpop.f32.mrb[7].mxu0  ;;  %v942_v39 = vpop.f32.mrb[7].mxu1 }
 0x10f   : > { %1060 = vst.msk [vmem:[%s1690_s21 + $0x18] sm:$0xff] %vm1056_vm3, %v813_v36  ;;  %1092 = vst.msk [vmem:[%s1690_s21 + $0x118] sm:$0xff] %vm1056_vm3, %v941_v37 }
 0x112   : > { %v817_v40 = vpop.f32.mrb[8].mxu0  ;;  %v945_v41 = vpop.f32.mrb[8].mxu1 }
 0x113   : > { %v818_v42 = vadd.f32 %v1683_v15, %v817_v40  ;;  %v946_v43 = vadd.f32 %v1683_v15, %v945_v41  ;;  %v819_v44 = vpop.f32.mrb[9].mxu0  ;;  %v947_v45 = vpop.f32.mrb[9].mxu1 }
 0x114   : > { %v820_v46 = vpop.f32.mrb[10].mxu0  ;;  %v948_v47 = vpop.f32.mrb[10].mxu1 }
 0x115   : > { %1061 = vst.msk [vmem:[%s1690_s21 + $0x20] sm:$0xff] %vm1056_vm3, %v818_v42  ;;  %1093 = vst.msk [vmem:[%s1690_s21 + $0x120] sm:$0xff] %vm1056_vm3, %v946_v43  ;;  %v821_v48 = vadd.f32 %v1683_v15, %v820_v46  ;;  %v949_v49 = vadd.f32 %v1683_v15, %v948_v47  ;;  %v822_v50 = vpop.f32.mrb[11].mxu0  ;;  %v950_v51 = vpop.f32.mrb[11].mxu1 }
 0x117   : > { %1062 = vst.msk [vmem:[%s1690_s21 + $0x28] sm:$0xff] %vm1056_vm3, %v821_v48  ;;  %1094 = vst.msk [vmem:[%s1690_s21 + $0x128] sm:$0xff] %vm1056_vm3, %v949_v49 }
 0x11a   : > { %v825_v52 = vpop.f32.mrb[12].mxu0  ;;  %v953_v53 = vpop.f32.mrb[12].mxu1 }
 0x11b   : > { %v826_v54 = vadd.f32 %v1683_v15, %v825_v52  ;;  %v954_v55 = vadd.f32 %v1683_v15, %v953_v53  ;;  %v827_v56 = vpop.f32.mrb[13].mxu0  ;;  %v955_v57 = vpop.f32.mrb[13].mxu1 }
 0x11c   : > { %v828_v58 = vpop.f32.mrb[14].mxu0  ;;  %v956_v59 = vpop.f32.mrb[14].mxu1 }
 0x11d   : > { %1063 = vst.msk [vmem:[%s1690_s21 + $0x30] sm:$0xff] %vm1056_vm3, %v826_v54  ;;  %1095 = vst.msk [vmem:[%s1690_s21 + $0x130] sm:$0xff] %vm1056_vm3, %v954_v55  ;;  %v829_v60 = vadd.f32 %v1683_v15, %v828_v58  ;;  %v957_v61 = vadd.f32 %v1683_v15, %v956_v59  ;;  %v830_v62 = vpop.f32.mrb[15].mxu0  ;;  %v958_v63 = vpop.f32.mrb[15].mxu1 }
 0x11f   : > { %1064 = vst.msk [vmem:[%s1690_s21 + $0x38] sm:$0xff] %vm1056_vm3, %v829_v60  ;;  %1096 = vst.msk [vmem:[%s1690_s21 + $0x138] sm:$0xff] %vm1056_vm3, %v957_v61 }
 0x122   : > { %v833_v0 = vpop.f32.mrb[16].mxu0  ;;  %v961_v1 = vpop.f32.mrb[16].mxu1 }
 0x123   : > { %v834_v2 = vadd.f32 %v1683_v15, %v833_v0  ;;  %v962_v3 = vadd.f32 %v1683_v15, %v961_v1  ;;  %v835_v4 = vpop.f32.mrb[17].mxu0  ;;  %v963_v5 = vpop.f32.mrb[17].mxu1 }
 0x124   : > { %v836_v6 = vpop.f32.mrb[18].mxu0  ;;  %v964_v7 = vpop.f32.mrb[18].mxu1 }
 0x125   : > { %1065 = vst.msk [vmem:[%s1690_s21 + $0x40] sm:$0xff] %vm1056_vm3, %v834_v2  ;;  %1097 = vst.msk [vmem:[%s1690_s21 + $0x140] sm:$0xff] %vm1056_vm3, %v962_v3  ;;  %v837_v8 = vadd.f32 %v1683_v15, %v836_v6  ;;  %v965_v9 = vadd.f32 %v1683_v15, %v964_v7  ;;  %v838_v10 = vpop.f32.mrb[19].mxu0  ;;  %v966_v11 = vpop.f32.mrb[19].mxu1 }
 0x127   : > { %1066 = vst.msk [vmem:[%s1690_s21 + $0x48] sm:$0xff] %vm1056_vm3, %v837_v8  ;;  %1098 = vst.msk [vmem:[%s1690_s21 + $0x148] sm:$0xff] %vm1056_vm3, %v965_v9 }
 0x12a   : > { %v841_v12 = vpop.f32.mrb[20].mxu0  ;;  %v969_v13 = vpop.f32.mrb[20].mxu1 }
 0x12b   : > { %v842_v14 = vadd.f32 %v1683_v15, %v841_v12  ;;  %v970_v16 = vadd.f32 %v1683_v15, %v969_v13  ;;  %v843_v17 = vpop.f32.mrb[21].mxu0  ;;  %v971_v18 = vpop.f32.mrb[21].mxu1 }
 0x12c   : > { %v844_v19 = vpop.f32.mrb[22].mxu0  ;;  %v972_v20 = vpop.f32.mrb[22].mxu1 }
 0x12d   : > { %1067 = vst.msk [vmem:[%s1690_s21 + $0x50] sm:$0xff] %vm1056_vm3, %v842_v14  ;;  %1099 = vst.msk [vmem:[%s1690_s21 + $0x150] sm:$0xff] %vm1056_vm3, %v970_v16  ;;  %v845_v21 = vadd.f32 %v1683_v15, %v844_v19  ;;  %v973_v22 = vadd.f32 %v1683_v15, %v972_v20  ;;  %v846_v23 = vpop.f32.mrb[23].mxu0  ;;  %v974_v24 = vpop.f32.mrb[23].mxu1 }
 0x12f   : > { %1068 = vst.msk [vmem:[%s1690_s21 + $0x58] sm:$0xff] %vm1056_vm3, %v845_v21  ;;  %1100 = vst.msk [vmem:[%s1690_s21 + $0x158] sm:$0xff] %vm1056_vm3, %v973_v22 }
 0x132   : > { %v849_v25 = vpop.f32.mrb[24].mxu0  ;;  %v977_v26 = vpop.f32.mrb[24].mxu1 }
 0x133   : > { %v850_v27 = vadd.f32 %v1683_v15, %v849_v25  ;;  %v978_v28 = vadd.f32 %v1683_v15, %v977_v26  ;;  %v851_v29 = vpop.f32.mrb[25].mxu0  ;;  %v979_v30 = vpop.f32.mrb[25].mxu1 }
 0x134   : > { %v852_v31 = vpop.f32.mrb[26].mxu0  ;;  %v980_v32 = vpop.f32.mrb[26].mxu1 }
 0x135   : > { %1069 = vst.msk [vmem:[%s1690_s21 + $0x60] sm:$0xff] %vm1056_vm3, %v850_v27  ;;  %1101 = vst.msk [vmem:[%s1690_s21 + $0x160] sm:$0xff] %vm1056_vm3, %v978_v28  ;;  %v853_v33 = vadd.f32 %v1683_v15, %v852_v31  ;;  %v981_v34 = vadd.f32 %v1683_v15, %v980_v32  ;;  %v854_v35 = vpop.f32.mrb[27].mxu0  ;;  %v982_v36 = vpop.f32.mrb[27].mxu1 }
 0x137   : > { %1070 = vst.msk [vmem:[%s1690_s21 + $0x68] sm:$0xff] %vm1056_vm3, %v853_v33  ;;  %1102 = vst.msk [vmem:[%s1690_s21 + $0x168] sm:$0xff] %vm1056_vm3, %v981_v34 }
 0x13a   : > { %v857_v37 = vpop.f32.mrb[28].mxu0  ;;  %v985_v38 = vpop.f32.mrb[28].mxu1 }
 0x13b   : > { %v858_v39 = vadd.f32 %v1683_v15, %v857_v37  ;;  %v986_v40 = vadd.f32 %v1683_v15, %v985_v38  ;;  %v859_v41 = vpop.f32.mrb[29].mxu0  ;;  %v987_v42 = vpop.f32.mrb[29].mxu1 }
 0x13c   : > { %v860_v43 = vpop.f32.mrb[30].mxu0  ;;  %v988_v44 = vpop.f32.mrb[30].mxu1 }
 0x13d   : > { %1071 = vst.msk [vmem:[%s1690_s21 + $0x70] sm:$0xff] %vm1056_vm3, %v858_v39  ;;  %1103 = vst.msk [vmem:[%s1690_s21 + $0x170] sm:$0xff] %vm1056_vm3, %v986_v40  ;;  %v861_v45 = vadd.f32 %v1683_v15, %v860_v43  ;;  %v989_v46 = vadd.f32 %v1683_v15, %v988_v44  ;;  %v862_v47 = vpop.f32.mrb[31].mxu0  ;;  %v990_v48 = vpop.f32.mrb[31].mxu1 }
 0x13f   : > { %1072 = vst.msk [vmem:[%s1690_s21 + $0x78] sm:$0xff] %vm1056_vm3, %v861_v45  ;;  %1104 = vst.msk [vmem:[%s1690_s21 + $0x178] sm:$0xff] %vm1056_vm3, %v989_v46 }
 0x142   : > { %v865_v49 = vpop.f32.mrb[32].mxu0  ;;  %v993_v50 = vpop.f32.mrb[32].mxu1 }
 0x143   : > { %v866_v51 = vadd.f32 %v1683_v15, %v865_v49  ;;  %v994_v52 = vadd.f32 %v1683_v15, %v993_v50  ;;  %v867_v53 = vpop.f32.mrb[33].mxu0  ;;  %v995_v54 = vpop.f32.mrb[33].mxu1 }
 0x144   : > { %v868_v55 = vpop.f32.mrb[34].mxu0  ;;  %v996_v56 = vpop.f32.mrb[34].mxu1 }
 0x145   : > { %1073 = vst.msk [vmem:[%s1690_s21 + $0x80] sm:$0xff] %vm1056_vm3, %v866_v51  ;;  %1105 = vst.msk [vmem:[%s1690_s21 + $0x180] sm:$0xff] %vm1056_vm3, %v994_v52  ;;  %v869_v57 = vadd.f32 %v1683_v15, %v868_v55  ;;  %v997_v58 = vadd.f32 %v1683_v15, %v996_v56  ;;  %v870_v59 = vpop.f32.mrb[35].mxu0  ;;  %v998_v60 = vpop.f32.mrb[35].mxu1 }
 0x147   : > { %1074 = vst.msk [vmem:[%s1690_s21 + $0x88] sm:$0xff] %vm1056_vm3, %v869_v57  ;;  %1106 = vst.msk [vmem:[%s1690_s21 + $0x188] sm:$0xff] %vm1056_vm3, %v997_v58 }
 0x14a   : > { %v873_v61 = vpop.f32.mrb[36].mxu0  ;;  %v1001_v62 = vpop.f32.mrb[36].mxu1 }
 0x14b   : > { %v874_v63 = vadd.f32 %v1683_v15, %v873_v61  ;;  %v1002_v0 = vadd.f32 %v1683_v15, %v1001_v62  ;;  %v875_v1 = vpop.f32.mrb[37].mxu0  ;;  %v1003_v2 = vpop.f32.mrb[37].mxu1 }
 0x14c   : > { %v876_v3 = vpop.f32.mrb[38].mxu0  ;;  %v1004_v4 = vpop.f32.mrb[38].mxu1 }
 0x14d   : > { %1075 = vst.msk [vmem:[%s1690_s21 + $0x90] sm:$0xff] %vm1056_vm3, %v874_v63  ;;  %1107 = vst.msk [vmem:[%s1690_s21 + $0x190] sm:$0xff] %vm1056_vm3, %v1002_v0  ;;  %v877_v5 = vadd.f32 %v1683_v15, %v876_v3  ;;  %v1005_v6 = vadd.f32 %v1683_v15, %v1004_v4  ;;  %v878_v7 = vpop.f32.mrb[39].mxu0  ;;  %v1006_v8 = vpop.f32.mrb[39].mxu1 }
 0x14f   : > { %1076 = vst.msk [vmem:[%s1690_s21 + $0x98] sm:$0xff] %vm1056_vm3, %v877_v5  ;;  %1108 = vst.msk [vmem:[%s1690_s21 + $0x198] sm:$0xff] %vm1056_vm3, %v1005_v6 }
 0x152   : > { %v881_v9 = vpop.f32.mrb[40].mxu0  ;;  %v1009_v10 = vpop.f32.mrb[40].mxu1 }
 0x153   : > { %v882_v11 = vadd.f32 %v1683_v15, %v881_v9  ;;  %v1010_v12 = vadd.f32 %v1683_v15, %v1009_v10  ;;  %v883_v13 = vpop.f32.mrb[41].mxu0  ;;  %v1011_v14 = vpop.f32.mrb[41].mxu1 }
 0x154   : > { %v884_v16 = vpop.f32.mrb[42].mxu0  ;;  %v1012_v17 = vpop.f32.mrb[42].mxu1 }
 0x155   : > { %1077 = vst.msk [vmem:[%s1690_s21 + $0xa0] sm:$0xff] %vm1056_vm3, %v882_v11  ;;  %1109 = vst.msk [vmem:[%s1690_s21 + $0x1a0] sm:$0xff] %vm1056_vm3, %v1010_v12  ;;  %v885_v18 = vadd.f32 %v1683_v15, %v884_v16  ;;  %v1013_v19 = vadd.f32 %v1683_v15, %v1012_v17  ;;  %v886_v20 = vpop.f32.mrb[43].mxu0  ;;  %v1014_v21 = vpop.f32.mrb[43].mxu1 }
 0x157   : > { %1078 = vst.msk [vmem:[%s1690_s21 + $0xa8] sm:$0xff] %vm1056_vm3, %v885_v18  ;;  %1110 = vst.msk [vmem:[%s1690_s21 + $0x1a8] sm:$0xff] %vm1056_vm3, %v1013_v19 }
 0x15a   : > { %v889_v22 = vpop.f32.mrb[44].mxu0  ;;  %v1017_v23 = vpop.f32.mrb[44].mxu1 }
 0x15b   : > { %v890_v24 = vadd.f32 %v1683_v15, %v889_v22  ;;  %v1018_v25 = vadd.f32 %v1683_v15, %v1017_v23  ;;  %v891_v26 = vpop.f32.mrb[45].mxu0  ;;  %v1019_v27 = vpop.f32.mrb[45].mxu1 }
 0x15c   : > { %v892_v28 = vpop.f32.mrb[46].mxu0  ;;  %v1020_v29 = vpop.f32.mrb[46].mxu1 }
 0x15d   : > { %1079 = vst.msk [vmem:[%s1690_s21 + $0xb0] sm:$0xff] %vm1056_vm3, %v890_v24  ;;  %1111 = vst.msk [vmem:[%s1690_s21 + $0x1b0] sm:$0xff] %vm1056_vm3, %v1018_v25  ;;  %v893_v30 = vadd.f32 %v1683_v15, %v892_v28  ;;  %v1021_v31 = vadd.f32 %v1683_v15, %v1020_v29  ;;  %v894_v32 = vpop.f32.mrb[47].mxu0  ;;  %v1022_v33 = vpop.f32.mrb[47].mxu1 }
 0x15f   : > { %1080 = vst.msk [vmem:[%s1690_s21 + $0xb8] sm:$0xff] %vm1056_vm3, %v893_v30  ;;  %1112 = vst.msk [vmem:[%s1690_s21 + $0x1b8] sm:$0xff] %vm1056_vm3, %v1021_v31 }
 0x162   : > { %v897_v34 = vpop.f32.mrb[48].mxu0  ;;  %v1025_v35 = vpop.f32.mrb[48].mxu1 }
 0x163   : > { %v898_v36 = vadd.f32 %v1683_v15, %v897_v34  ;;  %v1026_v37 = vadd.f32 %v1683_v15, %v1025_v35  ;;  %v899_v38 = vpop.f32.mrb[49].mxu0  ;;  %v1027_v39 = vpop.f32.mrb[49].mxu1 }
 0x164   : > { %v900_v40 = vpop.f32.mrb[50].mxu0  ;;  %v1028_v41 = vpop.f32.mrb[50].mxu1 }
 0x165   : > { %1081 = vst.msk [vmem:[%s1690_s21 + $0xc0] sm:$0xff] %vm1056_vm3, %v898_v36  ;;  %1113 = vst.msk [vmem:[%s1690_s21 + $0x1c0] sm:$0xff] %vm1056_vm3, %v1026_v37  ;;  %v901_v42 = vadd.f32 %v1683_v15, %v900_v40  ;;  %v1029_v43 = vadd.f32 %v1683_v15, %v1028_v41  ;;  %v902_v44 = vpop.f32.mrb[51].mxu0  ;;  %v1030_v45 = vpop.f32.mrb[51].mxu1 }
 0x167   : > { %1082 = vst.msk [vmem:[%s1690_s21 + $0xc8] sm:$0xff] %vm1056_vm3, %v901_v42  ;;  %1114 = vst.msk [vmem:[%s1690_s21 + $0x1c8] sm:$0xff] %vm1056_vm3, %v1029_v43 }
 0x16a   : > { %v905_v46 = vpop.f32.mrb[52].mxu0  ;;  %v1033_v47 = vpop.f32.mrb[52].mxu1 }
 0x16b   : > { %v906_v48 = vadd.f32 %v1683_v15, %v905_v46  ;;  %v1034_v49 = vadd.f32 %v1683_v15, %v1033_v47  ;;  %v907_v50 = vpop.f32.mrb[53].mxu0  ;;  %v1035_v51 = vpop.f32.mrb[53].mxu1 }
 0x16c   : > { %v908_v52 = vpop.f32.mrb[54].mxu0  ;;  %v1036_v53 = vpop.f32.mrb[54].mxu1 }
 0x16d   : > { %1083 = vst.msk [vmem:[%s1690_s21 + $0xd0] sm:$0xff] %vm1056_vm3, %v906_v48  ;;  %1115 = vst.msk [vmem:[%s1690_s21 + $0x1d0] sm:$0xff] %vm1056_vm3, %v1034_v49  ;;  %v909_v54 = vadd.f32 %v1683_v15, %v908_v52  ;;  %v1037_v55 = vadd.f32 %v1683_v15, %v1036_v53  ;;  %v910_v56 = vpop.f32.mrb[55].mxu0  ;;  %v1038_v57 = vpop.f32.mrb[55].mxu1 }
 0x16f   : > { %1084 = vst.msk [vmem:[%s1690_s21 + $0xd8] sm:$0xff] %vm1056_vm3, %v909_v54  ;;  %1116 = vst.msk [vmem:[%s1690_s21 + $0x1d8] sm:$0xff] %vm1056_vm3, %v1037_v55 }
 0x172   : > { %v913_v58 = vpop.f32.mrb[56].mxu0  ;;  %v1041_v59 = vpop.f32.mrb[56].mxu1 }
 0x173   : > { %v914_v60 = vadd.f32 %v1683_v15, %v913_v58  ;;  %v1042_v61 = vadd.f32 %v1683_v15, %v1041_v59  ;;  %v915_v62 = vpop.f32.mrb[57].mxu0  ;;  %v1043_v63 = vpop.f32.mrb[57].mxu1 }
 0x174   : > { %v916_v0 = vpop.f32.mrb[58].mxu0  ;;  %v1044_v1 = vpop.f32.mrb[58].mxu1 }
 0x175   : > { %1085 = vst.msk [vmem:[%s1690_s21 + $0xe0] sm:$0xff] %vm1056_vm3, %v914_v60  ;;  %1117 = vst.msk [vmem:[%s1690_s21 + $0x1e0] sm:$0xff] %vm1056_vm3, %v1042_v61  ;;  %v917_v2 = vadd.f32 %v1683_v15, %v916_v0  ;;  %v1045_v3 = vadd.f32 %v1683_v15, %v1044_v1  ;;  %v918_v4 = vpop.f32.mrb[59].mxu0  ;;  %v1046_v5 = vpop.f32.mrb[59].mxu1 }
 0x177   : > { %1086 = vst.msk [vmem:[%s1690_s21 + $0xe8] sm:$0xff] %vm1056_vm3, %v917_v2  ;;  %1118 = vst.msk [vmem:[%s1690_s21 + $0x1e8] sm:$0xff] %vm1056_vm3, %v1045_v3 }
 0x17a   : > { %v921_v6 = vpop.f32.mrb[60].mxu0  ;;  %v1049_v7 = vpop.f32.mrb[60].mxu1 }
 0x17b   : > { %v922_v8 = vadd.f32 %v1683_v15, %v921_v6  ;;  %v1050_v9 = vadd.f32 %v1683_v15, %v1049_v7  ;;  %v923_v10 = vpop.f32.mrb[61].mxu0  ;;  %v1051_v11 = vpop.f32.mrb[61].mxu1 }
 0x17c   : > { %v924_v12 = vpop.f32.mrb[62].mxu0  ;;  %v1052_v13 = vpop.f32.mrb[62].mxu1 }
 0x17d   : > { %1087 = vst.msk [vmem:[%s1690_s21 + $0xf0] sm:$0xff] %vm1056_vm3, %v922_v8  ;;  %1119 = vst.msk [vmem:[%s1690_s21 + $0x1f0] sm:$0xff] %vm1056_vm3, %v1050_v9  ;;  %v925_v14 = vadd.f32 %v1683_v15, %v924_v12  ;;  %v1053_v16 = vadd.f32 %v1683_v15, %v1052_v13  ;;  %v926_v17 = vpop.f32.mrb[63].mxu0  ;;  %v1054_v18 = vpop.f32.mrb[63].mxu1 }
 0x17f   : > { %1088 = vst.msk [vmem:[%s1690_s21 + $0xf8] sm:$0xff] %vm1056_vm3, %v925_v14  ;;  %1120 = vst.msk [vmem:[%s1690_s21 + $0x1f8] sm:$0xff] %vm1056_vm3, %v1053_v16 }
 0x180 PF: > { %s13_s14 = sadd.s32 1, %s1502_s14   ;;  %s1897_s12 = smov %s1498_s13 }
 0x181   : > { %p10_p5 = scmp.ge.s32.totalorder %s13_s14, 11   ;;  %s1898_s13 = smov %s1900_s15 }
 0x183   :  { %12 = sbr.rel (!%p10_p5) target bundleno = 2 (0x2), region = 65 }

</bundles_post_ra>
